<compile_context>
chip_gen: v7x
topology: tpu7x:2x2x1
jax: 0.10.0
libtpu: 0.0.40
codegen_flags: <defaults>
</compile_context>

<pallas_src>
import math

import jax
import jax.numpy as jnp
from jax.experimental import pallas as pl
from jax.experimental.pallas import tpu as pltpu

C_PAD = 128                      # lane-dense channel padding
BN_EPS = 1e-5
RESIDENT_MAX_N = 2048            # below this, keep the whole bf16 adjacency resident
VMEM_LIMIT = 64 * 1024 * 1024    # explicit scoped-VMEM limit (fits v7x's 64 MiB physical)


# ------------------------- fused resident kernel (small N) -------------------------


def _make_resident_kernel(num_layers):
    """All layers fused; adjacency / activations / stacked weights stay VMEM-resident."""

    def kernel(adj_ref, x_ref, w_ref, b_ref, o_ref):
        adj = adj_ref[...]                       # [N, N]      bf16
        h = x_ref[...]                           # [N, C_PAD]  bf16
        for li in range(num_layers):
            w = w_ref[li]                        # [C_PAD, C_PAD] bf16 (BN folded)
            b = b_ref[li]                        # [1, C_PAD]     f32  (BN folded; last
                                                 #   layer's padded lanes hold -1e30)
            # GCNConv: A_hat @ (h @ W') + b'  -> two MXU matmuls, f32 accumulation.
            z = jnp.dot(h, w, preferred_element_type=jnp.float32)
            z = jnp.dot(adj, z.astype(jnp.bfloat16),
                        preferred_element_type=jnp.float32) + b
            if li < num_layers - 1:
                # ReLU (dropout == identity in eval mode); bf16 for the next matmul.
                h = jnp.maximum(z, 0.0).astype(jnp.bfloat16)
            else:
                # Padded class lanes are already -1e30 via the folded bias.
                m = jnp.max(z, axis=-1, keepdims=True)
                s = z - m
                lse = jnp.log(jnp.sum(jnp.exp(s), axis=-1, keepdims=True))
                o_ref[...] = s - lse

    return kernel


def _resident_forward_call(adj_bf16, x_pad_bf16, w_stack, b_stack):
    n = x_pad_bf16.shape[0]
    num_layers = w_stack.shape[0]
    # No grid -> no revolving (double) buffers; whole arrays live in VMEM once.
    vmem = pl.BlockSpec(memory_space=pltpu.MemorySpace.VMEM)
    return pl.pallas_call(
        _make_resident_kernel(num_layers),
        out_shape=jax.ShapeDtypeStruct((n, C_PAD), jnp.float32),
        in_specs=[vmem, vmem, vmem, vmem],
        out_specs=vmem,
        compiler_params=pltpu.CompilerParams(vmem_limit_bytes=VMEM_LIMIT),
    )(adj_bf16, x_pad_bf16, w_stack, b_stack)


# ---------------------- row/k-tiled per-layer kernel (large N) ---------------------


def _make_tiled_layer_kernel(last):
    """out[i] = act( sum_k adj[i,k] @ z[k] + b ); accumulator pattern (P3)."""

    def kernel(adj_ref, z_ref, b_ref, o_ref, acc_ref):
        @pl.when(pl.program_id(1) == 0)
        def _init():
            acc_ref[...] = jnp.zeros_like(acc_ref)

        acc_ref[...] += jnp.dot(adj_ref[...], z_ref[...],
                                preferred_element_type=jnp.float32)

        @pl.when(pl.program_id(1) == pl.num_programs(1) - 1)
        def _finalize():
            y = acc_ref[...] + b_ref[...]
            if last:
                # Padded class lanes already -1e30 via the folded bias.
                m = jnp.max(y, axis=-1, keepdims=True)
                s = y - m
                lse = jnp.log(jnp.sum(jnp.exp(s), axis=-1, keepdims=True))
                o_ref[...] = s - lse
            else:
                o_ref[...] = jnp.maximum(y, 0.0).astype(o_ref.dtype)

    return kernel


def _tiled_layer_call(adj_bf16, z_bf16, bias_f32, *, tr, tk, last):
    n = adj_bf16.shape[0]
    out_dtype = jnp.float32 if last else jnp.bfloat16
    return pl.pallas_call(
        _make_tiled_layer_kernel(last),
        out_shape=jax.ShapeDtypeStruct((n, C_PAD), out_dtype),
        grid=(n // tr, n // tk),                              # reduction (k) axis LAST
        in_specs=[
            pl.BlockSpec((tr, tk), lambda i, k: (i, k)),      # streamed adjacency tile
            pl.BlockSpec((tk, C_PAD), lambda i, k: (k, 0)),   # z = h @ W' (hoisted)
            pl.BlockSpec((1, C_PAD), lambda i, k: (0, 0)),    # folded bias (resident)
        ],
        out_specs=pl.BlockSpec((tr, C_PAD), lambda i, k: (i, 0)),
        scratch_shapes=[pltpu.VMEM((tr, C_PAD), jnp.float32)],
        compiler_params=pltpu.CompilerParams(
            dimension_semantics=("parallel", "arbitrary"),    # rows split across TCs
            vmem_limit_bytes=VMEM_LIMIT),
    )(adj_bf16, z_bf16, bias_f32)


# ------------------------------- parameters / prep ---------------------------------


def init_gcn_params(key, in_channels, hidden_channels, out_channels, num_layers):
    """Deterministic parameters matching the module's shapes."""
    dims = [in_channels] + [hidden_channels] * (num_layers - 1) + [out_channels]
    params = []
    for li in range(num_layers):
        key, kw, kg, kb, kv = jax.random.split(key, 5)
        fan_in, fan_out = dims[li], dims[li + 1]
        limit = jnp.sqrt(6.0 / (fan_in + fan_out))            # glorot (GCNConv default)
        w = jax.random.uniform(kw, (fan_in, fan_out), jnp.float32, -limit, limit)
        layer = {"w": w, "b": jnp.zeros((1, fan_out), jnp.float32)}
        if li < num_layers - 1:                               # BN only on hidden layers
            layer["gamma"] = 1.0 + 0.1 * jax.random.normal(kg, (1, fan_out), jnp.float32)
            layer["beta"] = 0.1 * jax.random.normal(kb, (1, fan_out), jnp.float32)
            layer["mean"] = jnp.zeros((1, fan_out), jnp.float32)
            layer["var"] = 1.0 + 0.5 * jax.random.uniform(kv, (1, fan_out), jnp.float32)
        params.append(layer)
    return params


def prepare_gcn_params(params):
    """One-time prep: fold eval-mode BN, pad to 128 lanes, cast bf16, stack per layer."""
    num_layers = len(params)
    out_c = params[-1]["w"].shape[1]
    w_list, b_list = [], []
    for li, layer in enumerate(params):
        w, b = layer["w"], layer["b"]
        if "gamma" in layer:                                  # fold eval-mode BatchNorm
            scale = layer["gamma"] * jax.lax.rsqrt(layer["var"] + BN_EPS)
            w = w * scale
            b = (b - layer["mean"]) * scale + layer["beta"]
        wp = jnp.zeros((C_PAD, C_PAD), jnp.float32).at[:w.shape[0], :w.shape[1]].set(w)
        bp = jnp.zeros((1, C_PAD), jnp.float32).at[:, :b.shape[1]].set(b)
        if li == num_layers - 1:
            # Fold the padded-class mask into the last bias: fake-class logits become
            # -1e30, removing the in-kernel iota/compare/select.
            bp = bp.at[:, out_c:].set(-1e30)
        w_list.append(wp.astype(jnp.bfloat16))
        b_list.append(bp)                                     # bias add stays f32
    return jnp.stack(w_list), jnp.stack(b_list), num_layers, out_c


def normalize_adj(adj_dense):
    """gcn_norm: A_hat = D^-1/2 (A + I) D^-1/2  (plain-JAX glue, not the hot path)."""
    n = adj_dense.shape[0]
    a = adj_dense + jnp.eye(n, dtype=adj_dense.dtype)
    deg = jnp.sum(a, axis=1)
    d_inv_sqrt = jnp.where(deg > 0, 1.0 / jnp.sqrt(deg), 0.0)
    return a * d_inv_sqrt[:, None] * d_inv_sqrt[None, :]


# ---------------------------------- forward fns ------------------------------------


def _round_up(x, m):
    return (x + m - 1) // m * m


def build_forward_fns(num_layers, out_c, *, tr=256, tk=512):
    """tr: node-row tile (multiple of 8); tk: adjacency reduction tile (multiple of 128)."""

    @jax.jit
    def forward_resident(w_stack, b_stack, x, adj_hat):
        n, in_c = x.shape
        x_pad = jnp.zeros((n, C_PAD), jnp.float32).at[:, :in_c].set(x)
        out = _resident_forward_call(adj_hat.astype(jnp.bfloat16),
                                     x_pad.astype(jnp.bfloat16),
                                     w_stack, b_stack)
        return out[:, :out_c]

    @jax.jit
    def forward_tiled(w_stack, b_stack, x, adj_hat):
        n, in_c = x.shape
        n_pad = _round_up(n, math.lcm(tr, tk))
        x_pad = jnp.zeros((n_pad, C_PAD), jnp.float32).at[:n, :in_c].set(x)
        adj_pad = (jnp.zeros((n_pad, n_pad), jnp.float32)
                   .at[:n, :n].set(adj_hat).astype(jnp.bfloat16))
        h = x_pad.astype(jnp.bfloat16)
        for li in range(num_layers):
            last = li == num_layers - 1
            # Hoist h @ W' per layer (O(N*128*128), negligible vs. the O(N^2*128)
            # adjacency matmul) so the streamed inner loop is only adj_tile @ z_tile.
            z = jnp.dot(h, w_stack[li],
                        preferred_element_type=jnp.float32).astype(jnp.bfloat16)
            h = _tiled_layer_call(adj_pad, z, b_stack[li], tr=tr, tk=tk, last=last)
        return h[:n, :out_c]

    def forward(w_stack, b_stack, x, adj_hat):
        if x.shape[0] <= RESIDENT_MAX_N:
            return forward_resident(w_stack, b_stack, x, adj_hat)
        return forward_tiled(w_stack, b_stack, x, adj_hat)

    return forward, forward_resident, forward_tiled


def gcn_reference(params, x, adj_hat):
    """Plain-JAX f32 reference of the PyTorch forward (eval mode)."""
    h = x
    num_layers = len(params)
    for li, layer in enumerate(params):
        z = adj_hat @ (h @ layer["w"]) + layer["b"]
        if li < num_layers - 1:
            scale = layer["gamma"] * jax.lax.rsqrt(layer["var"] + BN_EPS)
            z = (z - layer["mean"]) * scale + layer["beta"]
            h = jnp.maximum(z, 0.0)
        else:
            h = jax.nn.log_softmax(z, axis=-1)
    return h


# -------------------------------------- main ----------------------------------------


if __name__ == "__main__":
    IN_C, HID_C, OUT_C, NUM_LAYERS = 16, 32, 8, 3
    DROPOUT = 0.5  # unused: inference mode (dropout == identity)

    key = jax.random.PRNGKey(0)
    k_x1, k_adj1, k_p, k_x2, k_adj2 = jax.random.split(key, 5)

    params = init_gcn_params(k_p, IN_C, HID_C, OUT_C, NUM_LAYERS)
    w_stack, b_stack, n_layers, out_c = prepare_gcn_params(params)   # host prep, once
    forward, forward_resident, forward_tiled = build_forward_fns(
        n_layers, out_c, tr=256, tk=512)

    def random_graph(kx, ka, n, density):
        x = jax.random.normal(kx, (n, IN_C), jnp.float32)
        a = (jax.random.uniform(ka, (n, n)) < density).astype(jnp.float32)
        a = jnp.maximum(a, a.T) * (1.0 - jnp.eye(n, dtype=jnp.float32))
        return x, normalize_adj(a)

    # Small graph -> fully fused, VMEM-resident, no-grid kernel.
    N1 = 64
    x1, adj1 = random_graph(k_x1, k_adj1, N1, 0.1)
    out1 = jax.block_until_ready(forward(w_stack, b_stack, x1, adj1))
    ref1 = gcn_reference(params, x1, adj1)
    assert out1.shape == (N1, OUT_C)
    assert bool(jnp.allclose(jnp.exp(out1).sum(-1), 1.0, atol=1e-3))
    assert bool(jnp.max(jnp.abs(out1 - ref1)) < 0.25)

    # Larger graph -> row/k-tiled streamed-adjacency path (exercised explicitly here).
    N2 = 1024
    x2, adj2 = random_graph(k_x2, k_adj2, N2, 0.02)
    out2 = jax.block_until_ready(forward_tiled(w_stack, b_stack, x2, adj2))
    ref2 = gcn_reference(params, x2, adj2)
    assert out2.shape == (N2, OUT_C)
    assert bool(jnp.allclose(jnp.exp(out2).sum(-1), 1.0, atol=1e-3))
    assert bool(jnp.max(jnp.abs(out2 - ref2)) < 0.25)

    print("KERNEL_OK")
</pallas_src>

<mosaic_0001>
module attributes {stable_mosaic.version = 11 : i64} {
  func.func @kernel(%arg0: memref<64x64xbf16, #tpu.memory_space<vmem>>, %arg1: memref<64x128xbf16, #tpu.memory_space<vmem>>, %arg2: memref<3x128x128xbf16, #tpu.memory_space<vmem>>, %arg3: memref<3x1x128xf32, #tpu.memory_space<vmem>>, %arg4: memref<64x128xf32, #tpu.memory_space<vmem>>) attributes {dimension_semantics = [], scalar_prefetch = 0 : i64, scratch_operands = 0 : i64, tpu.core_type = #tpu.core_type<tc>} {
    %c0 = arith.constant 0 : index
    %c0_0 = arith.constant 0 : index
    %0 = vector.load %arg0[%c0, %c0_0] : memref<64x64xbf16, #tpu.memory_space<vmem>>, vector<64x64xbf16>
    %c0_1 = arith.constant 0 : index
    %c0_2 = arith.constant 0 : index
    %1 = vector.load %arg1[%c0_1, %c0_2] : memref<64x128xbf16, #tpu.memory_space<vmem>>, vector<64x128xbf16>
    %c0_3 = arith.constant 0 : index
    %c0_4 = arith.constant 0 : index
    %c0_5 = arith.constant 0 : index
    %2 = vector.load %arg2[%c0_3, %c0_4, %c0_5] : memref<3x128x128xbf16, #tpu.memory_space<vmem>>, vector<1x128x128xbf16>
    %3 = vector.shape_cast %2 : vector<1x128x128xbf16> to vector<128x128xbf16>
    %c0_6 = arith.constant 0 : index
    %c0_7 = arith.constant 0 : index
    %c0_8 = arith.constant 0 : index
    %4 = vector.load %arg3[%c0_6, %c0_7, %c0_8] : memref<3x1x128xf32, #tpu.memory_space<vmem>>, vector<1x1x128xf32>
    %5 = vector.shape_cast %4 : vector<1x1x128xf32> to vector<1x128xf32>
    %cst = arith.constant dense<0.000000e+00> : vector<64x128xf32>
    %6 = tpu.matmul %1, %3, %cst {dimension_numbers = #tpu.dot_dimension_numbers<[1], [0], [0], [1], [0, 0, 1, 1], [], []>} : vector<64x128xbf16>, vector<128x128xbf16>, vector<64x128xf32> -> vector<64x128xf32>
    %7 = arith.truncf %6 : vector<64x128xf32> to vector<64x128xbf16>
    %cst_9 = arith.constant dense<0.000000e+00> : vector<64x128xf32>
    %8 = tpu.matmul %0, %7, %cst_9 {dimension_numbers = #tpu.dot_dimension_numbers<[1], [0], [0], [1], [0, 0, 1, 1], [], []>} : vector<64x64xbf16>, vector<64x128xbf16>, vector<64x128xf32> -> vector<64x128xf32>
    %9 = vector.broadcast %5 : vector<1x128xf32> to vector<64x128xf32>
    %10 = arith.addf %8, %9 : vector<64x128xf32>
    %cst_10 = arith.constant 0.000000e+00 : f32
    %11 = vector.broadcast %cst_10 : f32 to vector<64x128xf32>
    %12 = arith.maximumf %10, %11 : vector<64x128xf32>
    %13 = arith.truncf %12 : vector<64x128xf32> to vector<64x128xbf16>
    %c1 = arith.constant 1 : index
    %c0_11 = arith.constant 0 : index
    %c0_12 = arith.constant 0 : index
    %14 = vector.load %arg2[%c1, %c0_11, %c0_12] : memref<3x128x128xbf16, #tpu.memory_space<vmem>>, vector<1x128x128xbf16>
    %15 = vector.shape_cast %14 : vector<1x128x128xbf16> to vector<128x128xbf16>
    %c1_13 = arith.constant 1 : index
    %c0_14 = arith.constant 0 : index
    %c0_15 = arith.constant 0 : index
    %16 = vector.load %arg3[%c1_13, %c0_14, %c0_15] : memref<3x1x128xf32, #tpu.memory_space<vmem>>, vector<1x1x128xf32>
    %17 = vector.shape_cast %16 : vector<1x1x128xf32> to vector<1x128xf32>
    %cst_16 = arith.constant dense<0.000000e+00> : vector<64x128xf32>
    %18 = tpu.matmul %13, %15, %cst_16 {dimension_numbers = #tpu.dot_dimension_numbers<[1], [0], [0], [1], [0, 0, 1, 1], [], []>} : vector<64x128xbf16>, vector<128x128xbf16>, vector<64x128xf32> -> vector<64x128xf32>
    %19 = arith.truncf %18 : vector<64x128xf32> to vector<64x128xbf16>
    %cst_17 = arith.constant dense<0.000000e+00> : vector<64x128xf32>
    %20 = tpu.matmul %0, %19, %cst_17 {dimension_numbers = #tpu.dot_dimension_numbers<[1], [0], [0], [1], [0, 0, 1, 1], [], []>} : vector<64x64xbf16>, vector<64x128xbf16>, vector<64x128xf32> -> vector<64x128xf32>
    %21 = vector.broadcast %17 : vector<1x128xf32> to vector<64x128xf32>
    %22 = arith.addf %20, %21 : vector<64x128xf32>
    %cst_18 = arith.constant 0.000000e+00 : f32
    %23 = vector.broadcast %cst_18 : f32 to vector<64x128xf32>
    %24 = arith.maximumf %22, %23 : vector<64x128xf32>
    %25 = arith.truncf %24 : vector<64x128xf32> to vector<64x128xbf16>
    %c2 = arith.constant 2 : index
    %c0_19 = arith.constant 0 : index
    %c0_20 = arith.constant 0 : index
    %26 = vector.load %arg2[%c2, %c0_19, %c0_20] : memref<3x128x128xbf16, #tpu.memory_space<vmem>>, vector<1x128x128xbf16>
    %27 = vector.shape_cast %26 : vector<1x128x128xbf16> to vector<128x128xbf16>
    %c2_21 = arith.constant 2 : index
    %c0_22 = arith.constant 0 : index
    %c0_23 = arith.constant 0 : index
    %28 = vector.load %arg3[%c2_21, %c0_22, %c0_23] : memref<3x1x128xf32, #tpu.memory_space<vmem>>, vector<1x1x128xf32>
    %29 = vector.shape_cast %28 : vector<1x1x128xf32> to vector<1x128xf32>
    %cst_24 = arith.constant dense<0.000000e+00> : vector<64x128xf32>
    %30 = tpu.matmul %25, %27, %cst_24 {dimension_numbers = #tpu.dot_dimension_numbers<[1], [0], [0], [1], [0, 0, 1, 1], [], []>} : vector<64x128xbf16>, vector<128x128xbf16>, vector<64x128xf32> -> vector<64x128xf32>
    %31 = arith.truncf %30 : vector<64x128xf32> to vector<64x128xbf16>
    %cst_25 = arith.constant dense<0.000000e+00> : vector<64x128xf32>
    %32 = tpu.matmul %0, %31, %cst_25 {dimension_numbers = #tpu.dot_dimension_numbers<[1], [0], [0], [1], [0, 0, 1, 1], [], []>} : vector<64x64xbf16>, vector<64x128xbf16>, vector<64x128xf32> -> vector<64x128xf32>
    %33 = vector.broadcast %29 : vector<1x128xf32> to vector<64x128xf32>
    %34 = arith.addf %32, %33 : vector<64x128xf32>
    %cst_26 = arith.constant dense<0xFF800000> : vector<64xf32>
    %35 = vector.multi_reduction <maximumf>, %34, %cst_26 [1] : vector<64x128xf32> to vector<64xf32>
    %36 = vector.shape_cast %35 : vector<64xf32> to vector<64x1xf32>
    %37 = vector.broadcast %36 : vector<64x1xf32> to vector<64x128xf32>
    %38 = arith.subf %34, %37 : vector<64x128xf32>
    %39 = math.exp %38 : vector<64x128xf32>
    %cst_27 = arith.constant dense<0.000000e+00> : vector<64xf32>
    %40 = vector.multi_reduction <add>, %39, %cst_27 [1] : vector<64x128xf32> to vector<64xf32>
    %41 = vector.shape_cast %40 : vector<64xf32> to vector<64x1xf32>
    %42 = math.log %41 : vector<64x1xf32>
    %43 = vector.broadcast %42 : vector<64x1xf32> to vector<64x128xf32>
    %44 = arith.subf %38, %43 : vector<64x128xf32>
    %c0_28 = arith.constant 0 : index
    %c0_29 = arith.constant 0 : index
    %45 = vector.load %arg4[%c0_28, %c0_29] : memref<64x128xf32, #tpu.memory_space<vmem>>, vector<64x128xf32>
    tpu.vector_store %arg4[%c0_28, %c0_29], %44 {strides = array<i32>} : memref<64x128xf32, #tpu.memory_space<vmem>>, vector<64x128xf32>,
    return
  }
}

</mosaic_0001>

<bundles_post_ra>
// kernel: forward_resident.1
= control target key start
LH: loop header
LB: loop body
LE: loop exit
PB: predicated region body
PF: predicated region fallthrough
CT: control target
= control target key end

     0   :  { %9 = vsyncpa [#allocation3], 0  ;;  %s1501_s0 = inlined_call_operand.hbm [shape: bf16[64,64], index: 0, kind: input, shape index: {}]   ;;  %s1502_s1 = inlined_call_operand.hbm [shape: bf16[64,128], index: 1, kind: input, shape index: {}]   ;;  %s1503_s2 = inlined_call_operand.hbm [shape: bf16[3,128,128], index: 2, kind: input, shape index: {}]   ;;  %s1504_s3 = inlined_call_operand.hbm [shape: f32[3,1,128], index: 3, kind: input, shape index: {}]   ;;  %s1505_s4 = inlined_call_operand.hbm [shape: f32[64,128], index: 4, kind: output, shape index: {}]  }
   0x1   :  { %10 = vsyncpa [#allocation6], 0 }
   0x2   :  { %11 = vsyncpa [#allocation9], 0 }
   0x3   :  { %12 = vsyncpa [#allocation4], 0  ;;  %s1317_s15 = smov [#allocation5]   ;;  %s1318_s17 = smov [#allocation2]  }
   0x4   :  { %s30_s16 = sshll.u32 %s1317_s15, 4  ;;  %s18_s18 = sshll.u32 %s1318_s17, 4  ;;  %s31_s16 = int_to_ptr.vmem [resolvable:$true] %s30_s16  ;;  %s1353_s18 = int_to_ptr.vmem [resolvable:$true] %s18_s18 }
   0x5   :  { %s1199_s21 = scalar_lea.hbm %s1502_s1, 512 }
   0x6   :  { %p1200_p0 = scmp.ne.s32.totalorder %s1502_s1, %s1199_s21  ;;  %p1203_p1 = scmp.lt.u32.totalorder %s1199_s21, %s1502_s1 }
   0x8   :  { %p1205_p2 = pnand %p1203_p1, %p1200_p0 }
   0xa   :  { %1208 = shalt.err (!%p1205_p2)
}
   0xb   :  { %s1209_s26 = scalar_lea.vmem %s31_s16, 512  ;;  %p1214_p4 = scmp.lt.s32.totalorder %s31_s16, %s31_s16 }
   0xc   :  { %p1210_p3 = scmp.ne.s32.totalorder %s31_s16, %s1209_s26  ;;  %p1215_p5 = scmp.lt.s32.totalorder %s1209_s26, %s1209_s26 }
   0xe   :  { %p1216_p6 = por %p1215_p5, %p1214_p4 }
  0x10   :  { %p1217_p7 = pnand %p1216_p6, %p1210_p3 }
  0x12   :  { %1220 = shalt.err (!%p1217_p7)
}
  0x13   :  { %s1319_s27 = smov 64   ;;  %s1320_s28 = smov 4  }
  0x14   :  { %36 = dma.hbm_to_vmem [thread:$0]  %s1502_s1, 512, %s31_s16, [#allocation6], %s1319_s27, %s1319_s27, %s1320_s28  }
  0x15   :  { %s1221_s7 = scalar_lea.hbm %s1501_s0, 512 }
  0x16   :  { %p1222_p8 = scmp.ne.s32.totalorder %s1501_s0, %s1221_s7  ;;  %p1225_p9 = scmp.lt.u32.totalorder %s1221_s7, %s1501_s0 }
  0x18   :  { %p1227_p10 = pnand %p1225_p9, %p1222_p8 }
  0x1a   :  { %1230 = shalt.err (!%p1227_p10)
}
  0x1b   :  { %s1231_s12 = scalar_lea.vmem %s1353_s18, 512  ;;  %p1236_p12 = scmp.lt.s32.totalorder %s1353_s18, %s1353_s18 }
  0x1c   :  { %p1232_p11 = scmp.ne.s32.totalorder %s1353_s18, %s1231_s12  ;;  %p1237_p13 = scmp.lt.s32.totalorder %s1231_s12, %s1231_s12 }
  0x1e   :  { %p1238_p0 = por %p1237_p13, %p1236_p12 }
  0x20   :  { %p1239_p1 = pnand %p1238_p0, %p1232_p11 }
  0x22   :  { %1242 = shalt.err (!%p1239_p1)
}
  0x23   :  { %24 = dma.hbm_to_vmem [thread:$0]  %s1501_s0, 512, %s1353_s18, [#allocation3], %s1319_s27, %s1319_s27, %s1320_s28  }
  0x24   :  { %s1321_s14 = smov [#allocation7]   ;;  %s1322_s16 = smov [#allocation8]  }
  0x25   :  { %s42_s15 = sshll.u32 %s1321_s14, 4  ;;  %s54_s17 = sshll.u32 %s1322_s16, 4  ;;  %s43_s15 = int_to_ptr.vmem [resolvable:$true] %s42_s15  ;;  %s1390_s17 = int_to_ptr.vmem [resolvable:$true] %s54_s17 }
  0x26   :  { %s1243_s21 = scalar_lea.hbm %s1503_s2, 3072 }
  0x27   :  { %p1244_p2 = scmp.ne.s32.totalorder %s1503_s2, %s1243_s21  ;;  %p1247_p3 = scmp.lt.u32.totalorder %s1243_s21, %s1503_s2 }
  0x29   :  { %p1249_p4 = pnand %p1247_p3, %p1244_p2 }
  0x2b   :  { %1252 = shalt.err (!%p1249_p4)
}
  0x2c   :  { %s1253_s0 = scalar_lea.vmem %s43_s15, 3072  ;;  %p1258_p6 = scmp.lt.s32.totalorder %s43_s15, %s43_s15 }
  0x2d   :  { %p1254_p5 = scmp.ne.s32.totalorder %s43_s15, %s1253_s0  ;;  %p1259_p7 = scmp.lt.s32.totalorder %s1253_s0, %s1253_s0 }
  0x2f   :  { %p1260_p8 = por %p1259_p7, %p1258_p6 }
  0x31   :  { %p1261_p9 = pnand %p1260_p8, %p1254_p5 }
  0x33   :  { %1264 = shalt.err (!%p1261_p9)
}
  0x34   :  { %48 = dma.hbm_to_vmem [thread:$0]  %s1503_s2, 3072, %s43_s15, [#allocation6], %s1319_s27, %s1319_s27, %s1320_s28  }
  0x35   :  { %s1265_s5 = scalar_lea.hbm %s1504_s3, 48 }
  0x36   :  { %p1266_p10 = scmp.ne.s32.totalorder %s1504_s3, %s1265_s5  ;;  %p1269_p11 = scmp.lt.u32.totalorder %s1265_s5, %s1504_s3 }
  0x38   :  { %p1271_p12 = pnand %p1269_p11, %p1266_p10 }
  0x3a   :  { %1274 = shalt.err (!%p1271_p12)
}
  0x3b   :  { %s1275_s10 = scalar_lea.vmem %s1390_s17, 48  ;;  %s1279_s2 = scalar_lea.vmem %s1390_s17, 64 }
  0x3c   :  { %p1276_p13 = scmp.ne.s32.totalorder %s1390_s17, %s1275_s10  ;;  %p1280_p0 = scmp.lt.s32.totalorder %s1390_s17, %s1390_s17 }
  0x3d   :  { %p1281_p1 = scmp.lt.s32.totalorder %s1279_s2, %s1275_s10 }
  0x3f   :  { %p1282_p2 = por %p1281_p1, %p1280_p0 }
  0x41   :  { %p1283_p3 = pnand %p1282_p2, %p1276_p13 }
  0x43   :  { %1286 = shalt.err (!%p1283_p3)
}
  0x44   :  { %s1323_s27 = smov 16   ;;  %s1324_s28 = smov 1  }
  0x45   :  { %60 = dma.hbm_to_vmem [thread:$0]  %s1504_s3, 48, %s1390_s17, [#allocation9], %s1323_s27, %s1323_s27, %s1324_s28  }
  0x46   :  { %1309 = dma.done.wait [#allocation3], 512  }
  0x47   :  { %1310 = vsyncadd [#allocation3], 4294966784 }
  0x48   :  { %1311 = dma.done.wait [#allocation6], 3584  }
  0x49   :  { %1312 = vsyncadd [#allocation6], 4294963712 }
  0x4a   :  { %1313 = dma.done.wait [#allocation9], 48  }
  0x4b   :  { %1314 = vsyncadd [#allocation9], 4294967248  ;;  %v1135_v0 = vld [vmem:[#allocation7] sm:$0xff]   ;;  %v1136_v1 = vld [vmem:[#allocation7 + $0x8] sm:$0xff]   ;;  %vm274_vm0 = vcmask 523264   ;;  %s1325_s3 = smov [#allocation10]  }
  0x4c   :  { %1004 = vmatprep.subr.bf16.mxu0 %v1135_v0  ;;  %v1137_v2 = vld [vmem:[#allocation7 + $0x10] sm:$0xff]   ;;  %v1138_v3 = vld [vmem:[#allocation7 + $0x18] sm:$0xff]   ;;  %v1143_v4 = vld [vmem:[#allocation5] sm:$0xff]   ;;  %s883_s1 = sshll.u32 %s1325_s3, 4  ;;  %s884_s1 = int_to_ptr.vmem [resolvable:$true] %s883_s1 }
  0x4d   :  { %1005 = vmatpush3.bf16.msra.mxu0 %v1135_v0  ;;  %1020 = vmatprep.mubr.bf16.mxu0 %v1143_v4  ;;  %v1139_v5 = vld [vmem:[#allocation7 + $0x20] sm:$0xff]   ;;  %v1140_v6 = vld [vmem:[#allocation7 + $0x28] sm:$0xff]   ;;  %v1141_v7 = vld [vmem:[#allocation7 + $0x30] sm:$0xff]   ;;  %s1287_s13 = scalar_lea.vmem %s884_s1, 1024  ;;  %p1292_p5 = scmp.lt.s32.totalorder %s884_s1, %s884_s1 }
  0x4e   :  { %1006 = vmatprep.subr.bf16.mxu0 %v1136_v1  ;;  %v1142_v8 = vld [vmem:[#allocation7 + $0x38] sm:$0xff]   ;;  %v1144_v9 = vld [vmem:[#allocation5 + $0x8] sm:$0xff]   ;;  %v1145_v10 = vld [vmem:[#allocation5 + $0x10] sm:$0xff]   ;;  %p1288_p4 = scmp.ne.s32.totalorder %s884_s1, %s1287_s13  ;;  %p1293_p6 = scmp.lt.s32.totalorder %s1287_s13, %s1287_s13 }
  0x4f   :  { %v1146_v11 = vld [vmem:[#allocation5 + $0x18] sm:$0xff]   ;;  %v1425_v12 = vld [vmem:[#allocation2] sm:$0xff]   ;;  %v1431_v26 = vld [vmem:[#allocation2 + $0x8] sm:$0xff]  }
  0x50   :  { %1036 = vmatprep.mubr.msk.bf16.mxu1 %vm274_vm0, %v1425_v12  ;;  %v1151_v25 = vld [vmem:[#allocation7 + $0x40] sm:$0xff]   ;;  %v1433_v27 = vld [vmem:[#allocation2 + $0x10] sm:$0xff]   ;;  %v1152_v28 = vld [vmem:[#allocation7 + $0x48] sm:$0xff]   ;;  %p1294_p7 = por %p1293_p6, %p1292_p5 }
  0x51   :  { %1007 = vmatpush3.bf16.msra.mxu0 %v1136_v1  ;;  %v1153_v29 = vld [vmem:[#allocation7 + $0x50] sm:$0xff]   ;;  %v1439_v30 = vld [vmem:[#allocation2 + $0x18] sm:$0xff]   ;;  %v1155_v32 = vld [vmem:[#allocation7 + $0x60] sm:$0xff]  }
  0x52   :  { %1008 = vmatprep.subr.bf16.mxu0 %v1137_v2  ;;  %v1154_v31 = vld [vmem:[#allocation7 + $0x58] sm:$0xff]   ;;  %v1156_v33 = vld [vmem:[#allocation7 + $0x68] sm:$0xff]   ;;  %v1157_v34 = vld [vmem:[#allocation7 + $0x70] sm:$0xff]   ;;  %p1295_p8 = pnand %p1294_p7, %p1288_p4 }
  0x53   :  { %v1158_v35 = vld [vmem:[#allocation7 + $0x78] sm:$0xff]   ;;  %v909_v36 = vld [vmem:[#allocation8] ss:$0 sm:$0xff] }
  0x55   :  { %1009 = vmatpush3.bf16.msra.mxu0 %v1137_v2 }
  0x56   :  { %1010 = vmatprep.subr.bf16.mxu0 %v1138_v3 }
  0x59   :  { %1011 = vmatpush3.bf16.msra.mxu0 %v1138_v3 }
  0x5a   :  { %1012 = vmatprep.subr.bf16.mxu0 %v1139_v5 }
  0x5d   :  { %1013 = vmatpush3.bf16.msra.mxu0 %v1139_v5 }
  0x5e   :  { %1014 = vmatprep.subr.bf16.mxu0 %v1140_v6 }
  0x61   :  { %1015 = vmatpush3.bf16.msra.mxu0 %v1140_v6 }
  0x62   :  { %1016 = vmatprep.subr.bf16.mxu0 %v1141_v7 }
  0x65   :  { %1017 = vmatpush3.bf16.msra.mxu0 %v1141_v7 }
  0x66   :  { %1018 = vmatprep.subr.bf16.mxu0 %v1142_v8 }
  0x69   :  { %1019 = vmatpush3.bf16.msra.mxu0 %v1142_v8 }
  0x6c   :  { %1021 = vmatmul.mubr.bf16.vlgmr.msra.gmra.mrb[0].mxu0 %v1144_v9 }
  0x6d   :  { %1024 = vmatprep.mubr.bf16.mxu0 %v1145_v10 }
  0x74   :  { %1025 = vmatmul.mubr.bf16.gmra.mrb[4].mxu0 %v1146_v11 }
  0x75   :  { %1076 = vmatprep.mubr.msk.bf16.mxu0 %vm274_vm0, %v1425_v12 }
 0x13f   :  { %v1022_v13 = vpop.f32.mrb[0].mxu0 }
 0x140   :  { %v213_v14 = vpop.f32.mrb[1].mxu0 }
 0x141   :  { %v1023_v15 = vpop.f32.mrb[2].mxu0 }
 0x142   :  { %v245_v16 = vpack.c.bf16 %v1023_v15, %v1022_v13  ;;  %v216_v17 = vpop.f32.mrb[3].mxu0  ;;  %v1161_v15 = vld [vmem:[#allocation7 + $0x90] sm:$0xff]  }
 0x143   :  { %v244_v18 = vpack.c.bf16 %v216_v17, %v213_v14  ;;  %v1160_v14 = vld [vmem:[#allocation7 + $0x88] sm:$0xff]   ;;  %v1163_v17 = vld [vmem:[#allocation7 + $0xa0] sm:$0xff]  }
 0x145   :  { %1028 = vmatprep.subr.bf16.mxu1 %v244_v18 }
 0x146   :  { %1029 = vmatpush3.bf16.msra.mxu1 %v244_v18  ;;  %v1164_v18 = vld [vmem:[#allocation7 + $0xa8] sm:$0xff]  }
 0x147   :  { %v1026_v19 = vpop.f32.mrb[4].mxu0  ;;  %1030 = vmatprep.subr.bf16.mxu1 %v245_v16 }
 0x148   :  { %v229_v20 = vpop.f32.mrb[5].mxu0 }
 0x149   :  { %v1027_v21 = vpop.f32.mrb[6].mxu0 }
 0x14a   :  { %v247_v22 = vpack.c.bf16 %v1027_v21, %v1026_v19  ;;  %v232_v23 = vpop.f32.mrb[7].mxu0  ;;  %1031 = vmatpush3.bf16.msra.mxu1 %v245_v16  ;;  %v1162_v16 = vld [vmem:[#allocation7 + $0x98] sm:$0xff]   ;;  %v1165_v19 = vld [vmem:[#allocation7 + $0xb0] sm:$0xff]   ;;  %v926_v21 = vld [vmem:[#allocation8 + $0x1] ss:$0 sm:$0xff] }
 0x14b   :  { %v246_v24 = vpack.c.bf16 %v232_v23, %v229_v20  ;;  %v1166_v20 = vld [vmem:[#allocation7 + $0xb8] sm:$0xff]  }
 0x14d   :  { %1032 = vmatprep.subr.bf16.mxu1 %v246_v24 }
 0x14e   :  { %1033 = vmatpush3.bf16.msra.mxu1 %v246_v24 }
 0x14f   :  { %1034 = vmatprep.subr.bf16.mxu1 %v247_v22 }
 0x152   :  { %1035 = vmatpush3.bf16.msra.mxu1 %v247_v22 }
 0x153   :  { %1044 = vmatprep.subr.bf16.mxu1 %v1151_v25 }
 0x155   :  { %1037 = vmatmul.mubr.msk.bf16.vlgmr.msra.gmra.mrb[0].mxu1 %vm274_vm0, %v1431_v26 }
 0x156   :  { %1040 = vmatprep.mubr.msk.bf16.mxu1 %vm274_vm0, %v1433_v27  ;;  %1045 = vmatpush3.bf16.msra.mxu1 %v1151_v25 }
 0x157   :  { %1046 = vmatprep.subr.bf16.mxu1 %v1152_v28 }
 0x15a   :  { %1047 = vmatpush3.bf16.msra.mxu1 %v1152_v28 }
 0x15b   :  { %1048 = vmatprep.subr.bf16.mxu1 %v1153_v29 }
 0x15d   :  { %1041 = vmatmul.mubr.msk.bf16.gmra.mrb[4].mxu1 %vm274_vm0, %v1439_v30 }
 0x15e   :  { %1049 = vmatpush3.bf16.msra.mxu1 %v1153_v29 }
 0x15f   :  { %1050 = vmatprep.subr.bf16.mxu1 %v1154_v31 }
 0x162   :  { %1051 = vmatpush3.bf16.msra.mxu1 %v1154_v31 }
 0x163   :  { %1052 = vmatprep.subr.bf16.mxu1 %v1155_v32 }
 0x166   :  { %1053 = vmatpush3.bf16.msra.mxu1 %v1155_v32 }
 0x167   :  { %1054 = vmatprep.subr.bf16.mxu1 %v1156_v33 }
 0x16a   :  { %1055 = vmatpush3.bf16.msra.mxu1 %v1156_v33 }
 0x16b   :  { %1056 = vmatprep.subr.bf16.mxu1 %v1157_v34 }
 0x16e   :  { %1057 = vmatpush3.bf16.msra.mxu1 %v1157_v34 }
 0x16f   :  { %1058 = vmatprep.subr.bf16.mxu1 %v1158_v35 }
 0x172   :  { %1059 = vmatpush3.bf16.msra.mxu1 %v1158_v35 }
 0x228   :  { %v1038_v37 = vpop.f32.mrb[0].mxu1 }
 0x229   :  { %v330_v38 = vadd.f32 %v1038_v37, %v909_v36  ;;  %v321_v39 = vpop.f32.mrb[1].mxu1 }
 0x22a   :  { %v322_v40 = vadd.f32 %v909_v36, %v321_v39  ;;  %v1039_v41 = vpop.f32.mrb[2].mxu1 }
 0x22b   :  { %v333_v42 = vadd.f32 %v1039_v41, %v909_v36  ;;  %v324_v43 = vpop.f32.mrb[3].mxu1  ;;  %v354_v45 = vmax.f32 %v330_v38, 0.0 }
 0x22c   :  { %v325_v44 = vadd.f32 %v909_v36, %v324_v43  ;;  %v352_v47 = vmax.f32 %v322_v40, 0.0 }
 0x22d   :  { %v355_v46 = vmax.f32 %v333_v42, 0.0 }
 0x22e   :  { %v353_v48 = vmax.f32 %v325_v44, 0.0 }
 0x22f   :  { %v361_v49 = vpack.c.bf16 %v355_v46, %v354_v45 }
 0x230   :  { %v360_v50 = vpack.c.bf16 %v353_v48, %v352_v47  ;;  %v1042_v51 = vpop.f32.mrb[4].mxu1 }
 0x231   :  { %v346_v52 = vadd.f32 %v1042_v51, %v909_v36  ;;  %v337_v53 = vpop.f32.mrb[5].mxu1 }
 0x232   :  { %v338_v54 = vadd.f32 %v909_v36, %v337_v53  ;;  %v1043_v55 = vpop.f32.mrb[6].mxu1  ;;  %1060 = vmatprep.mubr.bf16.mxu1 %v360_v50 }
 0x233   :  { %v349_v56 = vadd.f32 %v1043_v55, %v909_v36  ;;  %v340_v57 = vpop.f32.mrb[7].mxu1  ;;  %1061 = vmatmul.mubr.bf16.vlgmr.msra.gmra.mrb[8].mxu1 %v361_v49  ;;  %v358_v59 = vmax.f32 %v346_v52, 0.0 }
 0x234   :  { %v341_v58 = vadd.f32 %v909_v36, %v340_v57  ;;  %v356_v61 = vmax.f32 %v338_v54, 0.0 }
 0x235   :  { %v359_v60 = vmax.f32 %v349_v56, 0.0 }
 0x236   :  { %v357_v62 = vmax.f32 %v341_v58, 0.0 }
 0x237   :  { %v363_v63 = vpack.c.bf16 %v359_v60, %v358_v59 }
 0x238   :  { %v362_v0 = vpack.c.bf16 %v357_v62, %v356_v61 }
 0x23a   :  { %1064 = vmatprep.mubr.bf16.mxu1 %v362_v0 }
 0x23b   :  { %1065 = vmatmul.mubr.bf16.gmra.mrb[12].mxu1 %v363_v63 }
 0x23c   :  { %1116 = vmatprep.mubr.msk.bf16.mxu1 %vm274_vm0, %v1425_v12  ;;  %v1159_v12 = vld [vmem:[#allocation7 + $0x80] sm:$0xff]  }
 0x306   :  { %v1062_v1 = vpop.f32.mrb[8].mxu1 }
 0x307   :  { %v465_v2 = vpop.f32.mrb[9].mxu1 }
 0x308   :  { %v1063_v3 = vpop.f32.mrb[10].mxu1 }
 0x309   :  { %v497_v4 = vpack.c.bf16 %v1063_v3, %v1062_v1  ;;  %v468_v5 = vpop.f32.mrb[11].mxu1  ;;  %v939_v1 = vld [vmem:[#allocation8 + $0x2] ss:$0 sm:$0xff] }
 0x30a   :  { %v496_v6 = vpack.c.bf16 %v468_v5, %v465_v2 }
 0x30c   :  { %1068 = vmatprep.subr.bf16.mxu0 %v496_v6 }
 0x30d   :  { %1069 = vmatpush3.bf16.msra.mxu0 %v496_v6 }
 0x30e   :  { %v1066_v7 = vpop.f32.mrb[12].mxu1  ;;  %1070 = vmatprep.subr.bf16.mxu0 %v497_v4 }
 0x30f   :  { %v481_v8 = vpop.f32.mrb[13].mxu1 }
 0x310   :  { %v1067_v9 = vpop.f32.mrb[14].mxu1 }
 0x311   :  { %v499_v10 = vpack.c.bf16 %v1067_v9, %v1066_v7  ;;  %v484_v11 = vpop.f32.mrb[15].mxu1  ;;  %1071 = vmatpush3.bf16.msra.mxu0 %v497_v4 }
 0x312   :  { %v498_v13 = vpack.c.bf16 %v484_v11, %v481_v8 }
 0x314   :  { %1072 = vmatprep.subr.bf16.mxu0 %v498_v13 }
 0x315   :  { %1073 = vmatpush3.bf16.msra.mxu0 %v498_v13 }
 0x316   :  { %1074 = vmatprep.subr.bf16.mxu0 %v499_v10 }
 0x319   :  { %1075 = vmatpush3.bf16.msra.mxu0 %v499_v10 }
 0x31a   :  { %1084 = vmatprep.subr.bf16.mxu0 %v1159_v12 }
 0x31c   :  { %1077 = vmatmul.mubr.msk.bf16.vlgmr.msra.gmra.mrb[8].mxu0 %vm274_vm0, %v1431_v26 }
 0x31d   :  { %1080 = vmatprep.mubr.msk.bf16.mxu0 %vm274_vm0, %v1433_v27  ;;  %1085 = vmatpush3.bf16.msra.mxu0 %v1159_v12 }
 0x31e   :  { %1086 = vmatprep.subr.bf16.mxu0 %v1160_v14 }
 0x321   :  { %1087 = vmatpush3.bf16.msra.mxu0 %v1160_v14 }
 0x322   :  { %1088 = vmatprep.subr.bf16.mxu0 %v1161_v15 }
 0x324   :  { %1081 = vmatmul.mubr.msk.bf16.gmra.mrb[12].mxu0 %vm274_vm0, %v1439_v30 }
 0x325   :  { %1089 = vmatpush3.bf16.msra.mxu0 %v1161_v15 }
 0x326   :  { %1090 = vmatprep.subr.bf16.mxu0 %v1162_v16 }
 0x329   :  { %1091 = vmatpush3.bf16.msra.mxu0 %v1162_v16 }
 0x32a   :  { %1092 = vmatprep.subr.bf16.mxu0 %v1163_v17 }
 0x32d   :  { %1093 = vmatpush3.bf16.msra.mxu0 %v1163_v17 }
 0x32e   :  { %1094 = vmatprep.subr.bf16.mxu0 %v1164_v18 }
 0x331   :  { %1095 = vmatpush3.bf16.msra.mxu0 %v1164_v18 }
 0x332   :  { %1096 = vmatprep.subr.bf16.mxu0 %v1165_v19 }
 0x335   :  { %1097 = vmatpush3.bf16.msra.mxu0 %v1165_v19 }
 0x336   :  { %1098 = vmatprep.subr.bf16.mxu0 %v1166_v20 }
 0x339   :  { %1099 = vmatpush3.bf16.msra.mxu0 %v1166_v20 }
 0x3ef   :  { %v1078_v22 = vpop.f32.mrb[8].mxu0 }
 0x3f0   :  { %v549_v23 = vadd.f32 %v1078_v22, %v926_v21  ;;  %v540_v24 = vpop.f32.mrb[9].mxu0 }
 0x3f1   :  { %v541_v25 = vadd.f32 %v926_v21, %v540_v24  ;;  %v1079_v28 = vpop.f32.mrb[10].mxu0 }
 0x3f2   :  { %v552_v29 = vadd.f32 %v1079_v28, %v926_v21  ;;  %v543_v31 = vpop.f32.mrb[11].mxu0  ;;  %v573_v33 = vmax.f32 %v549_v23, 0.0 }
 0x3f3   :  { %v544_v32 = vadd.f32 %v926_v21, %v543_v31  ;;  %v571_v35 = vmax.f32 %v541_v25, 0.0 }
 0x3f4   :  { %v574_v34 = vmax.f32 %v552_v29, 0.0 }
 0x3f5   :  { %v572_v36 = vmax.f32 %v544_v32, 0.0 }
 0x3f6   :  { %v580_v37 = vpack.c.bf16 %v574_v34, %v573_v33 }
 0x3f7   :  { %v579_v38 = vpack.c.bf16 %v572_v36, %v571_v35  ;;  %v1082_v39 = vpop.f32.mrb[12].mxu0 }
 0x3f8   :  { %v565_v40 = vadd.f32 %v1082_v39, %v926_v21  ;;  %v556_v41 = vpop.f32.mrb[13].mxu0 }
 0x3f9   :  { %v557_v42 = vadd.f32 %v926_v21, %v556_v41  ;;  %v1083_v43 = vpop.f32.mrb[14].mxu0  ;;  %1100 = vmatprep.mubr.bf16.mxu0 %v579_v38 }
 0x3fa   :  { %v568_v44 = vadd.f32 %v1083_v43, %v926_v21  ;;  %v559_v45 = vpop.f32.mrb[15].mxu0  ;;  %1101 = vmatmul.mubr.bf16.vlgmr.msra.gmra.mrb[16].mxu0 %v580_v37  ;;  %v577_v47 = vmax.f32 %v565_v40, 0.0 }
 0x3fb   :  { %v560_v46 = vadd.f32 %v926_v21, %v559_v45  ;;  %v575_v49 = vmax.f32 %v557_v42, 0.0 }
 0x3fc   :  { %v578_v48 = vmax.f32 %v568_v44, 0.0 }
 0x3fd   :  { %v576_v50 = vmax.f32 %v560_v46, 0.0 }
 0x3fe   :  { %v582_v51 = vpack.c.bf16 %v578_v48, %v577_v47 }
 0x3ff   :  { %v581_v52 = vpack.c.bf16 %v576_v50, %v575_v49 }
 0x401   :  { %1104 = vmatprep.mubr.bf16.mxu0 %v581_v52 }
 0x402   :  { %1105 = vmatmul.mubr.bf16.gmra.mrb[20].mxu0 %v582_v51 }
 0x4cd   :  { %v1102_v53 = vpop.f32.mrb[16].mxu0 }
 0x4ce   :  { %v684_v54 = vpop.f32.mrb[17].mxu0 }
 0x4cf   :  { %v1103_v55 = vpop.f32.mrb[18].mxu0 }
 0x4d0   :  { %v716_v56 = vpack.c.bf16 %v1103_v55, %v1102_v53  ;;  %v687_v57 = vpop.f32.mrb[19].mxu0 }
 0x4d1   :  { %v715_v58 = vpack.c.bf16 %v687_v57, %v684_v54 }
 0x4d3   :  { %1108 = vmatprep.subr.bf16.mxu1 %v715_v58 }
 0x4d4   :  { %1109 = vmatpush3.bf16.msra.mxu1 %v715_v58 }
 0x4d5   :  { %v1106_v59 = vpop.f32.mrb[20].mxu0  ;;  %1110 = vmatprep.subr.bf16.mxu1 %v716_v56 }
 0x4d6   :  { %v700_v60 = vpop.f32.mrb[21].mxu0 }
 0x4d7   :  { %v1107_v61 = vpop.f32.mrb[22].mxu0 }
 0x4d8   :  { %v718_v62 = vpack.c.bf16 %v1107_v61, %v1106_v59  ;;  %v703_v63 = vpop.f32.mrb[23].mxu0  ;;  %1111 = vmatpush3.bf16.msra.mxu1 %v716_v56 }
 0x4d9   :  { %v717_v0 = vpack.c.bf16 %v703_v63, %v700_v60 }
 0x4db   :  { %1112 = vmatprep.subr.bf16.mxu1 %v717_v0 }
 0x4dc   :  { %1113 = vmatpush3.bf16.msra.mxu1 %v717_v0 }
 0x4dd   :  { %1114 = vmatprep.subr.bf16.mxu1 %v718_v62 }
 0x4e0   :  { %1115 = vmatpush3.bf16.msra.mxu1 %v718_v62 }
 0x4e3   :  { %1117 = vmatmul.mubr.msk.bf16.vlgmr.msra.gmra.mrb[16].mxu1 %vm274_vm0, %v1431_v26 }
 0x4e4   :  { %1120 = vmatprep.mubr.msk.bf16.mxu1 %vm274_vm0, %v1433_v27 }
 0x4eb   :  { %1121 = vmatmul.mubr.msk.bf16.gmra.mrb[20].mxu1 %vm274_vm0, %v1439_v30 }
 0x5b6   :  { %v1118_v2 = vpop.f32.mrb[16].mxu1 }
 0x5b7   :  { %v768_v3 = vadd.f32 %v1118_v2, %v939_v1  ;;  %v759_v4 = vpop.f32.mrb[17].mxu1 }
 0x5b8   :  { %v760_v5 = vadd.f32 %v939_v1, %v759_v4  ;;  %v1119_v6 = vpop.f32.mrb[18].mxu1 }
 0x5b9   :  { %794 = vmax.xlane.f32.xlu1 %v768_v3  ;;  %v762_v7 = vpop.f32.mrb[19].mxu1  ;;  %v771_v8 = vadd.f32 %v1119_v6, %v939_v1 }
 0x5ba   :  { %790 = vmax.xlane.f32.xlu0 %v760_v5  ;;  %v763_v9 = vadd.f32 %v939_v1, %v762_v7 }
 0x5bd   :  { %796 = vmax.xlane.f32.xlu1 %v771_v8 }
 0x5be   :  { %v1122_v10 = vpop.f32.mrb[20].mxu1  ;;  %792 = vmax.xlane.f32.xlu0 %v763_v9 }
 0x5bf   :  { %v775_v26 = vpop.f32.mrb[21].mxu1  ;;  %v784_v30 = vadd.f32 %v1122_v10, %v939_v1 }
 0x5c0   :  { %v776_v11 = vadd.f32 %v939_v1, %v775_v26  ;;  %v1123_v27 = vpop.f32.mrb[22].mxu1 }
 0x5c1   :  { %v778_v13 = vpop.f32.mrb[23].mxu1  ;;  %v787_v14 = vadd.f32 %v1123_v27, %v939_v1 }
 0x5c2   :  { %v779_v12 = vadd.f32 %v939_v1, %v778_v13  ;;  %798 = vmax.xlane.f32.xlu0 %v776_v11 }
 0x5c4   :  { %800 = vmax.xlane.f32.xlu1 %v779_v12 }
 0x5c6   :  { %802 = vmax.xlane.f32.xlu0 %v784_v30 }
 0x5c8   :  { %804 = vmax.xlane.f32.xlu1 %v787_v14 }
 0x646   :  { %v795_v15 = vpop.xlane.xlu1 %794 }
 0x647   :  { %v1457_v16 = vsub.f32 %v768_v3, %v795_v15  ;;  %v791_v17 = vpop.xlane.xlu0 %790 }
 0x648   :  { %v1459_v18 = vsub.f32 %v760_v5, %v791_v17 }
 0x649   :  { %v818_v19 = vmul.f32 1.442695, %v1457_v16 }
 0x64a   :  { %v814_v20 = vmul.f32 1.442695, %v1459_v18  ;;  %v797_v21 = vpop.xlane.xlu1 %796 }
 0x64b   :  { %1167 = vpow2.f32 %v818_v19  ;;  %v1463_v22 = vsub.f32 %v771_v8, %v797_v21  ;;  %v793_v23 = vpop.xlane.xlu0 %792 }
 0x64c   :  { %v1465_v24 = vsub.f32 %v763_v9, %v793_v23  ;;  %1169 = vpow2.f32 %v814_v20 }
 0x64d   :  { %v820_v25 = vmul.f32 1.442695, %v1463_v22 }
 0x64e   :  { %v816_v28 = vmul.f32 1.442695, %v1465_v24 }
 0x64f   :  { %1171 = vpow2.f32 %v820_v25  ;;  %v799_v29 = vpop.xlane.xlu0 %798 }
 0x650   :  { %v1469_v31 = vsub.f32 %v776_v11, %v799_v29  ;;  %1173 = vpow2.f32 %v816_v28 }
 0x651   :  { %v801_v32 = vpop.xlane.xlu1 %800 }
 0x652   :  { %v822_v33 = vmul.f32 1.442695, %v1469_v31  ;;  %v1472_v34 = vsub.f32 %v779_v12, %v801_v32 }
 0x653   :  { %v803_v35 = vpop.xlane.xlu0 %802 }
 0x654   :  { %1175 = vpow2.f32 %v822_v33  ;;  %v824_v36 = vmul.f32 1.442695, %v1472_v34  ;;  %v1475_v37 = vsub.f32 %v784_v30, %v803_v35 }
 0x655   :  { %v1168_v38 = vpop.eup %1167  ;;  %v805_v39 = vpop.xlane.xlu1 %804 }
 0x656   :  { %1177 = vpow2.f32 %v824_v36  ;;  %v826_v40 = vmul.f32 1.442695, %v1475_v37  ;;  %v1478_v41 = vsub.f32 %v787_v14, %v805_v39  ;;  %834 = vadd.xlane.f32.xlu0 %v1168_v38  ;;  %v1170_v42 = vpop.eup %1169 }
 0x658   :  { %1179 = vpow2.f32 %v826_v40  ;;  %v828_v43 = vmul.f32 1.442695, %v1478_v41 }
 0x659   :  { %v1172_v44 = vpop.eup %1171 }
 0x65a   :  { %1181 = vpow2.f32 %v828_v43  ;;  %836 = vadd.xlane.f32.xlu1 %v1172_v44  ;;  %830 = vadd.xlane.f32.xlu0 %v1170_v42  ;;  %v1174_v45 = vpop.eup %1173 }
 0x65e   :  { %v1176_v46 = vpop.eup %1175  ;;  %832 = vadd.xlane.f32.xlu1 %v1174_v45 }
 0x65f   :  { %838 = vadd.xlane.f32.xlu0 %v1176_v46 }
 0x660   :  { %v1178_v47 = vpop.eup %1177 }
 0x662   :  { %v1180_v48 = vpop.eup %1179  ;;  %840 = vadd.xlane.f32.xlu1 %v1178_v47 }
 0x663   :  { %842 = vadd.xlane.f32.xlu0 %v1180_v48 }
 0x664   :  { %v1182_v49 = vpop.eup %1181 }
 0x666   :  { %844 = vadd.xlane.f32.xlu1 %v1182_v49 }
 0x6e3   :  { %v835_v50 = vpop.xlane.xlu0 %834 }
 0x6e4   :  { %1183 = vlog2.f32 %v835_v50 }
 0x6e7   :  { %v837_v51 = vpop.xlane.xlu1 %836  ;;  %v831_v52 = vpop.xlane.xlu0 %830 }
 0x6e8   :  { %1185 = vlog2.f32 %v837_v51 }
 0x6e9   :  { %1187 = vlog2.f32 %v831_v52 }
 0x6eb   :  { %v833_v53 = vpop.xlane.xlu1 %832 }
 0x6ec   :  { %1189 = vlog2.f32 %v833_v53  ;;  %v839_v54 = vpop.xlane.xlu0 %838 }
 0x6ed   :  { %1191 = vlog2.f32 %v839_v54 }
 0x6ee   :  { %v1184_v55 = vpop.eup %1183 }
 0x6ef   :  { %v851_v56 = vmul.f32 0.6931472, %v1184_v55  ;;  %v841_v57 = vpop.xlane.xlu1 %840 }
 0x6f0   :  { %1193 = vlog2.f32 %v841_v57  ;;  %v843_v58 = vpop.xlane.xlu0 %842 }
 0x6f1   :  { %v864_v59 = vsub.f32 %v1457_v16, %v851_v56  ;;  %1195 = vlog2.f32 %v843_v58 }
 0x6f2   :  { %v1186_v60 = vpop.eup %1185 }
 0x6f3   :  { %v1188_v61 = vpop.eup %1187  ;;  %872 = vst [vmem:[#allocation10 + $0x10] sm:$0xff] %v864_v59  ;;  %v853_v62 = vmul.f32 0.6931472, %v1186_v60  ;;  %v845_v63 = vpop.xlane.xlu1 %844 }
 0x6f4   :  { %v847_v0 = vmul.f32 0.6931472, %v1188_v61  ;;  %1197 = vlog2.f32 %v845_v63 }
 0x6f5   :  { %v865_v1 = vsub.f32 %v1463_v22, %v853_v62 }
 0x6f6   :  { %v1190_v2 = vpop.eup %1189  ;;  %v862_v3 = vsub.f32 %v1459_v18, %v847_v0 }
 0x6f7   :  { %v1192_v4 = vpop.eup %1191  ;;  %873 = vst [vmem:[#allocation10 + $0x18] sm:$0xff] %v865_v1  ;;  %v849_v5 = vmul.f32 0.6931472, %v1190_v2 }
 0x6f8   :  { %870 = vst [vmem:[#allocation10] sm:$0xff] %v862_v3  ;;  %v855_v6 = vmul.f32 0.6931472, %v1192_v4 }
 0x6f9   :  { %v863_v7 = vsub.f32 %v1465_v24, %v849_v5 }
 0x6fa   :  { %v1194_v8 = vpop.eup %1193  ;;  %v866_v9 = vsub.f32 %v1469_v31, %v855_v6 }
 0x6fb   :  { %v1196_v10 = vpop.eup %1195  ;;  %871 = vst [vmem:[#allocation10 + $0x8] sm:$0xff] %v863_v7  ;;  %v857_v26 = vmul.f32 0.6931472, %v1194_v8 }
 0x6fc   :  { %874 = vst [vmem:[#allocation10 + $0x20] sm:$0xff] %v866_v9  ;;  %v859_v11 = vmul.f32 0.6931472, %v1196_v10 }
 0x6fd   :  { %v867_v27 = vsub.f32 %v1472_v34, %v857_v26 }
 0x6fe   :  { %v1198_v13 = vpop.eup %1197  ;;  %v868_v12 = vsub.f32 %v1475_v37, %v859_v11 }
 0x6ff   :  { %875 = vst [vmem:[#allocation10 + $0x28] sm:$0xff] %v867_v27  ;;  %v861_v30 = vmul.f32 0.6931472, %v1198_v13 }
 0x700   :  { %876 = vst [vmem:[#allocation10 + $0x30] sm:$0xff] %v868_v12 }
 0x701   :  { %v869_v14 = vsub.f32 %v1478_v41, %v861_v30 }
 0x703   :  { %877 = vst [vmem:[#allocation10 + $0x38] sm:$0xff] %v869_v14 }
 0x704   :  { %1298 = shalt.err (!%p1295_p8)
}
 0x705   :  { %s1299_s16 = scalar_lea.hbm %s1505_s4, 1024 }
 0x706   :  { %p1300_p9 = scmp.ne.s32.totalorder %s1505_s4, %s1299_s16  ;;  %p1303_p10 = scmp.lt.u32.totalorder %s1299_s16, %s1505_s4 }
 0x708   :  { %p1305_p11 = pnand %p1303_p10, %p1300_p9 }
 0x70a   :  { %1308 = shalt.err (!%p1305_p11)
}
 0x70b   :  { %s1326_s22 = smov 128   ;;  %s1327_s23 = smov 8  }
 0x70c   :  { %889 = dma.vmem_to_hbm [thread:$0]  %s884_s1, 1024, %s1505_s4, [#allocation4], %s1326_s22, %s1326_s22, %s1327_s23  }
 0x70d   :  { %1315 = dma.done.wait [#allocation4], 1024  }
 0x70e   :  { %1316 = vsyncadd [#allocation4], 4294966272 }
 0x70f   :  { %893 = vsyncpa [#allocation3], 1 }
 0x710   :  { %894 = vsyncpa [#allocation6], 1 }
 0x711   :  { %895 = vsyncpa [#allocation9], 1 }
 0x712   :  { %896 = vsyncpa [#allocation4], 1 }

</bundles_post_ra>
